<compile_context>
chip_gen: v7x
topology: tpu7x:2x2x1
jax: 0.10.0
libtpu: 0.0.40
codegen_flags: <defaults>
</compile_context>

<pallas_src>
import functools

import jax
import jax.numpy as jnp
from jax.experimental import pallas as pl
from jax.experimental.pallas import tpu as pltpu


def _sort2(a, b):
    return jnp.minimum(a, b), jnp.maximum(a, b)


def _median_of_9(v):
    """Elementwise median of 9 arrays.

    Paeth's 19-compare-exchange median-of-9 network (Graphics Gems), with the
    compare results that never feed the median pruned -> 30 min/max ops.
    """
    p0, p1, p2, p3, p4, p5, p6, p7, p8 = v
    p1, p2 = _sort2(p1, p2); p4, p5 = _sort2(p4, p5); p7, p8 = _sort2(p7, p8)
    p0, p1 = _sort2(p0, p1); p3, p4 = _sort2(p3, p4); p6, p7 = _sort2(p6, p7)
    p1, p2 = _sort2(p1, p2); p4, p5 = _sort2(p4, p5); p7, p8 = _sort2(p7, p8)
    p3 = jnp.maximum(p0, p3)          # sort(p0,p3): only the max survives
    p5 = jnp.minimum(p5, p8)          # sort(p5,p8): only the min survives
    p4, p7 = _sort2(p4, p7)
    p6 = jnp.maximum(p3, p6)          # sort(p3,p6)
    p4 = jnp.maximum(p1, p4)          # sort(p1,p4)
    p2 = jnp.minimum(p2, p5)          # sort(p2,p5)
    p4 = jnp.minimum(p4, p7)          # sort(p4,p7)
    p4, p2 = _sort2(p4, p2)
    p4 = jnp.maximum(p6, p4)          # sort(p6,p4)
    return jnp.minimum(p4, p2)        # sort(p4,p2) -> p4 is the median


def _median_filter_kernel(xp_ref, o_ref, *, k, H):
    """One padded, lane-folded group slab (1, Hp_a, WL) -> (1, H, WL) medians.

    The slab holds G reflect-padded images laid side by side along the lane
    axis (each Wp = W + 2p lanes wide, then zero-padded so WL % 128 == 0 and
    Hp_a % 8 == 0).  The median is computed at *every* lane; the wrapper keeps
    only the W valid lanes of each image, so cross-image / zero-pad
    contamination never reaches the result.
    """
    xp = xp_ref[0]                     # (Hp_a, WL), (8,128)-aligned value
    wl = xp.shape[-1]
    p = k // 2

    # Column (lane) shifts via XLU rotation, symmetric offsets {-p..+p}.
    cols = [xp]
    for s in range(1, p + 1):
        cols.append(pltpu.roll(xp, s, axis=1))
        cols.append(pltpu.roll(xp, wl - s, axis=1))

    # Row (sublane) shifts: static slices of in-register values.
    vals = []
    for col in cols:
        for dy in range(k):
            vals.append(col[dy:dy + H, :])

    if k == 3:
        o_ref[0] = _median_of_9(vals)
    else:
        # Generic odd kernel sizes: odd-even transposition sort, then pick the
        # (k*k)//2-th smallest (the element torch.median returns for odd k*k).
        # TODO(synk): replace with a partial-selection network for k >= 5.
        n = len(vals)
        for phase in range(n):
            for i in range(phase % 2, n - 1, 2):
                lo = jnp.minimum(vals[i], vals[i + 1])
                hi = jnp.maximum(vals[i], vals[i + 1])
                vals[i], vals[i + 1] = lo, hi
        o_ref[0] = vals[n // 2]


def _round_up(x, m):
    return -(-x // m) * m


def median_filter_2d(image, kernel_size=3):
    """JAX/Pallas equivalent of MedianFilter2D.forward (always returns 4-D)."""
    if kernel_size % 2 == 0:
        raise ValueError('Kernel size must be odd')

    if image.ndim == 2:
        x = image[None, None]
    elif image.ndim == 3:
        x = image[:, None]
    elif image.ndim == 4:
        x = image
    else:
        raise ValueError('Expected 2D, 3D or 4D input')

    B, C, H, W = x.shape
    k = kernel_size
    p = k // 2
    Hp, Wp = H + 2 * p, W + 2 * p
    N = B * C

    # Reflect padding + flattening of batch/channel dims (cheap XLA pre-pass).
    # TODO(synk): fold the reflect halo into the kernel to save one HBM pass.
    xp = jnp.pad(x, ((0, 0), (0, 0), (p, p), (p, p)), mode='reflect')
    xp = xp.reshape(N, Hp, Wp)

    # ---- choose the channel-group size G (images folded per grid step) ----
    itemsize = jnp.dtype(x.dtype).itemsize
    g_lane = max(1, -(-512 // Wp))                     # aim for >= ~512 lanes
    per_image = (k * k + 8) * Hp * Wp * itemsize       # rough VMEM working set
    g_mem = max(1, (8 * 1024 * 1024) // per_image)     # stay well under VMEM
    G = int(max(1, min(N, g_lane, g_mem)))
    if N > 1:                                          # keep >=2 grid steps so
        G = min(G, -(-N // 2))                         # v7x can use both TCs
    # TODO(synk): add H-tiling with halos for images too large for whole-slab
    # blocking (needed on v7x's 64 MiB VMEM for multi-megapixel inputs).

    NG = -(-N // G)
    N_pad = NG * G
    if N_pad != N:
        xp = jnp.pad(xp, ((0, N_pad - N), (0, 0), (0, 0)))

    # Fold G padded images side by side along the lane axis; align extents to
    # (8, 128) so the kernel only ever touches dense, aligned tiles.
    xg = xp.reshape(NG, G, Hp, Wp).transpose(0, 2, 1, 3).reshape(NG, Hp, G * Wp)
    Hp_a = _round_up(Hp, 8)
    WL = _round_up(G * Wp, 128)
    xg = jnp.pad(xg, ((0, 0), (0, Hp_a - Hp), (0, WL - G * Wp)))

    kernel = functools.partial(_median_filter_kernel, k=k, H=H)

    out = pl.pallas_call(
        kernel,
        out_shape=jax.ShapeDtypeStruct((NG, H, WL), x.dtype),
        grid=(NG,),
        in_specs=[pl.BlockSpec((1, Hp_a, WL), lambda i: (i, 0, 0))],
        out_specs=pl.BlockSpec((1, H, WL), lambda i: (i, 0, 0)),
        compiler_params=pltpu.CompilerParams(
            dimension_semantics=("parallel",),
            vmem_limit_bytes=32 * 1024 * 1024,
        ),
    )(xg)

    # Un-fold: keep the W valid lanes of each image, drop pad columns/images.
    out = out[:, :, :G * Wp].reshape(NG, H, G, Wp)[..., p:p + W]
    out = out.transpose(0, 2, 1, 3).reshape(N_pad, H, W)[:N]
    return out.reshape(B, C, H, W)


def _reference_median_filter(x, kernel_size=3):
    """Pure-JAX reference (same semantics) for validation."""
    if x.ndim == 2:
        x = x[None, None]
    elif x.ndim == 3:
        x = x[:, None]
    p = kernel_size // 2
    H, W = x.shape[-2:]
    xp = jnp.pad(x, ((0, 0), (0, 0), (p, p), (p, p)), mode='reflect')
    patches = []
    for dy in range(kernel_size):
        for dx in range(kernel_size):
            patches.append(xp[..., dy:dy + H, dx:dx + W])
    stacked = jnp.stack(patches, axis=-1)
    return jnp.sort(stacked, axis=-1)[..., (kernel_size * kernel_size) // 2]


if __name__ == "__main__":
    key = jax.random.PRNGKey(0)
    # Small NCHW input consistent with the module's 4-D path.
    x = jax.random.normal(key, (2, 4, 16, 16), dtype=jnp.float32)

    out = median_filter_2d(x, kernel_size=3)
    out = jax.block_until_ready(out)

    ref = _reference_median_filter(x, kernel_size=3)
    assert out.shape == (2, 4, 16, 16)
    assert jnp.allclose(out, ref, atol=0.0, rtol=0.0), "median filter mismatch"

    print("KERNEL_OK")
</pallas_src>

<mosaic_0001>
module attributes {stable_mosaic.version = 11 : i64} {
  func.func @_median_filter_kernel(%arg0: i32, %arg1: memref<1x24x128xf32, #tpu.memory_space<vmem>>, %arg2: memref<1x16x128xf32, #tpu.memory_space<vmem>>) attributes {dimension_semantics = [#tpu.dimension_semantics<parallel>], iteration_bounds = array<i64: 2>, scalar_prefetch = 0 : i64, scratch_operands = 0 : i64, tpu.core_type = #tpu.core_type<tc>, window_params = [{transform_indices = @transform_0, window_bounds = array<i64: 1, 24, 128>}, {transform_indices = @transform_1, window_bounds = array<i64: 1, 16, 128>}]} {
    %c0 = arith.constant 0 : index
    %c0_0 = arith.constant 0 : index
    %c0_1 = arith.constant 0 : index
    %0 = vector.load %arg1[%c0, %c0_0, %c0_1] : memref<1x24x128xf32, #tpu.memory_space<vmem>>, vector<1x24x128xf32>
    %1 = vector.shape_cast %0 : vector<1x24x128xf32> to vector<24x128xf32>
    %c1_i32 = arith.constant 1 : i32
    %2 = tpu.dynamic_rotate %1 by %c1_i32 dim 1 : vector<24x128xf32>, i32 -> vector<24x128xf32>
    %c127_i32 = arith.constant 127 : i32
    %3 = tpu.dynamic_rotate %1 by %c127_i32 dim 1 : vector<24x128xf32>, i32 -> vector<24x128xf32>
    %4 = vector.extract_strided_slice %1 {offsets = [0, 0], sizes = [16, 128], strides = [1, 1]} : vector<24x128xf32> to vector<16x128xf32>
    %5 = vector.extract_strided_slice %1 {offsets = [1, 0], sizes = [16, 128], strides = [1, 1]} : vector<24x128xf32> to vector<16x128xf32>
    %6 = vector.extract_strided_slice %1 {offsets = [2, 0], sizes = [16, 128], strides = [1, 1]} : vector<24x128xf32> to vector<16x128xf32>
    %7 = vector.extract_strided_slice %2 {offsets = [0, 0], sizes = [16, 128], strides = [1, 1]} : vector<24x128xf32> to vector<16x128xf32>
    %8 = vector.extract_strided_slice %2 {offsets = [1, 0], sizes = [16, 128], strides = [1, 1]} : vector<24x128xf32> to vector<16x128xf32>
    %9 = vector.extract_strided_slice %2 {offsets = [2, 0], sizes = [16, 128], strides = [1, 1]} : vector<24x128xf32> to vector<16x128xf32>
    %10 = vector.extract_strided_slice %3 {offsets = [0, 0], sizes = [16, 128], strides = [1, 1]} : vector<24x128xf32> to vector<16x128xf32>
    %11 = vector.extract_strided_slice %3 {offsets = [1, 0], sizes = [16, 128], strides = [1, 1]} : vector<24x128xf32> to vector<16x128xf32>
    %12 = vector.extract_strided_slice %3 {offsets = [2, 0], sizes = [16, 128], strides = [1, 1]} : vector<24x128xf32> to vector<16x128xf32>
    %13 = arith.minimumf %5, %6 : vector<16x128xf32>
    %14 = arith.maximumf %5, %6 : vector<16x128xf32>
    %15 = arith.minimumf %8, %9 : vector<16x128xf32>
    %16 = arith.maximumf %8, %9 : vector<16x128xf32>
    %17 = arith.minimumf %11, %12 : vector<16x128xf32>
    %18 = arith.maximumf %11, %12 : vector<16x128xf32>
    %19 = arith.minimumf %4, %13 : vector<16x128xf32>
    %20 = arith.maximumf %4, %13 : vector<16x128xf32>
    %21 = arith.minimumf %7, %15 : vector<16x128xf32>
    %22 = arith.maximumf %7, %15 : vector<16x128xf32>
    %23 = arith.minimumf %10, %17 : vector<16x128xf32>
    %24 = arith.maximumf %10, %17 : vector<16x128xf32>
    %25 = arith.minimumf %20, %14 : vector<16x128xf32>
    %26 = arith.maximumf %20, %14 : vector<16x128xf32>
    %27 = arith.minimumf %22, %16 : vector<16x128xf32>
    %28 = arith.maximumf %22, %16 : vector<16x128xf32>
    %29 = arith.minimumf %24, %18 : vector<16x128xf32>
    %30 = arith.maximumf %24, %18 : vector<16x128xf32>
    %31 = arith.maximumf %19, %21 : vector<16x128xf32>
    %32 = arith.minimumf %28, %30 : vector<16x128xf32>
    %33 = arith.minimumf %27, %29 : vector<16x128xf32>
    %34 = arith.maximumf %27, %29 : vector<16x128xf32>
    %35 = arith.maximumf %31, %23 : vector<16x128xf32>
    %36 = arith.maximumf %25, %33 : vector<16x128xf32>
    %37 = arith.minimumf %26, %32 : vector<16x128xf32>
    %38 = arith.minimumf %36, %34 : vector<16x128xf32>
    %39 = arith.minimumf %38, %37 : vector<16x128xf32>
    %40 = arith.maximumf %38, %37 : vector<16x128xf32>
    %41 = arith.maximumf %35, %39 : vector<16x128xf32>
    %42 = arith.minimumf %41, %40 : vector<16x128xf32>
    %c0_2 = arith.constant 0 : index
    %c0_3 = arith.constant 0 : index
    %c0_4 = arith.constant 0 : index
    %43 = vector.load %arg2[%c0_2, %c0_3, %c0_4] : memref<1x16x128xf32, #tpu.memory_space<vmem>>, vector<1x16x128xf32>
    %44 = vector.shape_cast %43 : vector<1x16x128xf32> to vector<16x128xf32>
    %45 = vector.shape_cast %42 : vector<16x128xf32> to vector<1x16x128xf32>
    tpu.vector_store %arg2[%c0_2, %c0_3, %c0_4], %45 {strides = array<i32>} : memref<1x16x128xf32, #tpu.memory_space<vmem>>, vector<1x16x128xf32>,
    return
  }
  func.func @transform_0(%arg0: i32) -> (i32, i32, i32) {
    %c0_i32 = arith.constant 0 : i32
    %c0_i32_0 = arith.constant 0 : i32
    %c0_i32_1 = arith.constant 0 : i32
    return %arg0, %c0_i32, %c0_i32_0 : i32, i32, i32
  }
  func.func @transform_1(%arg0: i32) -> (i32, i32, i32) {
    %c0_i32 = arith.constant 0 : i32
    %c0_i32_0 = arith.constant 0 : i32
    %c0_i32_1 = arith.constant 0 : i32
    return %arg0, %c0_i32, %c0_i32_0 : i32, i32, i32
  }
}

</mosaic_0001>

<bundles_post_ra>
// kernel: tpu_custom_call.1
= control target key start
LH: loop header
LB: loop body
LE: loop exit
PB: predicated region body
PF: predicated region fallthrough
CT: control target
= control target key end

     0   :  { %6 = vsyncpa [#allocation3], 0  ;;  %s845_s0 = inlined_call_operand.hbm [shape: f32[2,24,128], index: 0, kind: input, shape index: {}]   ;;  %s846_s1 = inlined_call_operand.hbm [shape: f32[2,16,128], index: 1, kind: output, shape index: {}]  }
   0x1   :  { %8 = vsyncpa [#allocation3 + $0x1], 0 }
   0x2   :  { %9 = vsyncpa [#allocation4], 0 }
   0x3   :  { %11 = vsyncpa [#allocation4 + $0x1], 0  ;;  %s582_s6 = smov 0   ;;  %s584_s7 = smov 0  }
   0x4   :  { %s586_s8 = smov 0   ;;  %s588_s9 = smov 0  }
   0x5 LB: > { %s603_s10 = sadd.s32 4294967295, %s562_s9   ;;  %s399_s11 = sadd.s32 4294967294, %s562_s9   ;;  %s562_s9 = sphi %s588_s9, %s858_s9   ;;  %s558_s8 = sphi %s586_s8, %s857_s8   ;;  %s554_s7 = sphi %s584_s7, %s856_s7   ;;  %s550_s6 = sphi %s582_s6, %s855_s6  }
   0x6   : > { %s607_s12 = sadd.s32 1, %s562_s9   ;;  %s24_s13 = sadd.s32 1, %s558_s8 }
   0x7   : > { %s21_s14 = ssub.s32 %s562_s9, %s607_s12  ;;  %p31_p0 = scmp.ne.s32.totalorder %s558_s8, %s554_s7 }
   0x8   : > { %p22_p1 = scmp.eq.s32.totalorder %s21_s14, 0  ;;  %p32_p2 = scmp.eq.s32.totalorder %s562_s9, 0 }
   0x9   : > { %p37_p3 = scmp.ne.s32.totalorder %s554_s7, %s550_s6  ;;  %p38_p4 = scmp.eq.s32.totalorder %s603_s10, 0 }
   0xa   : > { %s619_s15 = scalar_select %p22_p1, %s558_s8, %s24_s13  }
   0xb   : > { %p33_p5 = por %p32_p2, %p31_p0  ;;  %p621_p6 = por %p38_p4, %p37_p3 }
   0xc   : > { %p61_p7 = scmp.eq.s32.totalorder %s603_s10, 1  ;;  %p67_p8 = scmp.eq.s32.totalorder %s399_s11, 1 }
   0xd   : > { %p426_p10 = scmp.lt.s32.totalorder %s562_s9, 2  ;;  %s87_s19 = sand.u32 1, %s558_s8  }
   0xe   : > { %p628_p11 = por %p61_p7, %p31_p0  ;;  %p632_p12 = por %p67_p8, %p37_p3 }
   0xf   : > { %s412_s20 = smul.u32 384, %s562_s9  ;;  %p643_p13 = pnand %p426_p10, %p33_p5 }
  0x10   : > { %s849_s17 = scalar_select %p628_p11, 1, 0 }
  0x11   : > { %s850_s18 = scalar_select %p632_p12, 1, 0 }
  0x12   : > { %s411_s21 = smul.u32 24, %s87_s19  ;;  %s641_s24 = scalar_lea.hbm %s845_s0, %s412_s20 }
  0x13   : > { %s649_s28 = scalar_lea.sflag [#allocation3], %s87_s19  ;;  %s466_s29 = scalar_lea.hbm %s641_s24, 384 }
  0x14   : > { %s91_s26 = scalar_lea.vmem [#allocation2], %s411_s21  ;;  %p467_p0 = scmp.ne.s32.totalorder %s641_s24, %s466_s29 }
  0x15   : > { %s98_s27 = sshll.u32 %s91_s26, 4  ;;  %p468_p1 = pneg %p643_p13  ;;  %s647_s27 = int_to_ptr.vmem [resolvable:$true] %s98_s27 }
  0x16   : > { %s471_s3 = scalar_lea.hbm %s845_s0, 768  ;;  %p472_p4 = scmp.lt.u32.totalorder %s641_s24, %s845_s0 }
  0x17   : > { %p469_p2 = pnand %p468_p1, %p467_p0  ;;  %p473_p5 = scmp.lt.u32.totalorder %s471_s3, %s466_s29 }
  0x18   : > { %p475_p8 = scmp.lt.u32.totalorder %s466_s29, %s641_s24 }
  0x19   : > { %p470_p3 = pneg %p469_p2  ;;  %p474_p7 = por %p473_p5, %p472_p4 }
  0x1b   : > { %p476_p10 = por %p475_p8, %p474_p7 }
  0x1d   : > { %p477_p9 = pnand %p476_p10, %p470_p3 }
  0x1f   : > { %480 = shalt.err (!%p477_p9)
}
  0x20   : > { %s481_s11 = scalar_lea.vmem %s647_s27, 384  ;;  %s564_s13 = smov [#allocation2]  }
  0x21   : > { %p482_p0 = scmp.ne.s32.totalorder %s647_s27, %s481_s11  ;;  %s486_s14 = sshll.u32 %s564_s13, 4  ;;  %s487_s14 = int_to_ptr.vmem [resolvable:$false] %s486_s14 }
  0x22   : > { %s488_s19 = scalar_lea.vmem %s487_s14, 768  ;;  %p489_p11 = scmp.lt.s32.totalorder %s647_s27, %s487_s14 }
  0x23   : > { %p484_p2 = pnand %p482_p0, %p468_p1  ;;  %p490_p4 = scmp.lt.s32.totalorder %s488_s19, %s481_s11 }
  0x25   : > { %p485_p12 = pneg %p484_p2  ;;  %p491_p5 = por %p490_p4, %p489_p11 }
  0x27   : > { %p492_p7 = pnand %p491_p5, %p485_p12 }
  0x29   : > { %495 = shalt.err (!%p492_p7)
}
  0x2a   : > { %s565_s20 = smov 128   ;;  %s566_s21 = smov 8  }
  0x2b   : > { %421 = dma.hbm_to_vmem [thread:$0]  (!%p643_p13), %s641_s24, 384, %s647_s27, %s649_s28, %s565_s20, %s565_s20, %s566_s21  }
  0x2c   : > { %p403_p9 = scmp.ge.s32.totalorder %s562_s9, 1  ;;  %p106_p1 = scmp.lt.s32.totalorder %s562_s9, 3 }
  0x2e   : > { %p107_p3 = pnand %p403_p9, %p106_p1 }
  0x2f   : > { %s680_s22 = sand.u32 (!%p107_p3), 1, %s554_s7  }
  0x30   : > { %110 = sbr.rel (%p107_p3) target bundleno = 220 (0xdc), region = 24  ;;  %s113_s26 = scalar_lea.sflag (!%p107_p3), [#allocation3], %s680_s22 }
  0x31   : > { %s413_s23 = smul.u32 (!%p107_p3), 24, %s680_s22 }
  0x33   : > { %s116_s29 = scalar_lea.vmem (!%p107_p3), [#allocation2], %s413_s23 }
  0x37   : > { %541 = dma.done.wait (%p621_p6), %s113_s26, 384  }
  0x38   : > { %543 = vsyncadd (%p621_p6), %s113_s26, 4294966912  ;;  %v137_v0 = vld [vmem:[%s116_s29 + $0x10] sm:$0xff]  ;;  %v688_v1 = vld [vmem:[%s116_s29] sm:$0xff]  ;;  %vm153_vm0 = vcmask 1046528   ;;  %s567_s24 = smov 1   ;;  %s568_s16 = smov 127  }
  0x39   : > { %v690_v2 = vld [vmem:[%s116_s29 + $0x8] sm:$0xff]  ;;  %142 = vrot.lane.b32.xlu1 %v137_v0, %s567_s24  ;;  %v157_v3 = vrot.slane %v137_v0, 1  ;;  %138 = vrot.lane.b32.xlu0 %v688_v1, %s567_s24  ;;  %v154_v4 = vrot.slane %v688_v1, 1  ;;  %s404_s25 = sshll.u32 %s680_s22, 4  ;;  %s410_s27 = sshll.u32 %s603_s10, 8 }
  0x3a   : > { %v155_v5 = vrot.slane %v690_v2, 1  ;;  %s134_s28 = scalar_lea.vmem [#allocation5], %s404_s25  ;;  %s799_s4 = scalar_lea.hbm %s846_s1, %s410_s27 }
  0x3b   : > { %v164_v6 = vmin.f32 %v137_v0, %v157_v3  ;;  %v167_v7 = vmax.f32 %v137_v0, %v157_v3  ;;  %s326_s30 = sshll.u32 %s134_s28, 4  ;;  %s313_s5 = scalar_lea.sflag [#allocation4], %s680_s22  ;;  %s801_s30 = int_to_ptr.vmem [resolvable:$true] %s326_s30 }
  0x3c   : > { %v158_v8 = vsel %vm153_vm0, %v155_v5, %v157_v3  ;;  %v156_v9 = vsel %vm153_vm0, %v154_v4, %v155_v5  ;;  %s496_s10 = scalar_lea.vmem %s801_s30, 256  ;;  %p852_p11 = scmp.ne.s32.totalorder %s849_s17, 0 }
  0x3d   : > { %v163_v10 = vmin.f32 %v690_v2, %v158_v8  ;;  %v166_v11 = vmax.f32 %v690_v2, %v158_v8  ;;  %v162_v12 = vmin.f32 %v688_v1, %v156_v9  ;;  %v165_v13 = vmax.f32 %v688_v1, %v156_v9  ;;  %144 = vrot.lane.b32.xlu1 %v688_v1, %s568_s16  ;;  %p497_p6 = scmp.ne.s32.totalorder %s801_s30, %s496_s10  ;;  %s569_s11 = smov [#allocation5]  }
  0x3e   : > { %v208_v14 = vrot.slane %v164_v6, 1  ;;  %v250_v15 = vrot.slane %v167_v7, 1  ;;  %140 = vrot.lane.b32.xlu0 %v690_v2, %s567_s24  ;;  %s500_s13 = sshll.u32 %s569_s11, 4  ;;  %s501_s13 = int_to_ptr.vmem [resolvable:$false] %s500_s13 }
  0x3f   : > { %v206_v16 = vrot.slane %v163_v10, 1  ;;  %v248_v17 = vrot.slane %v166_v11, 1  ;;  %v205_v18 = vrot.slane %v162_v12, 1  ;;  %v247_v19 = vrot.slane %v165_v13, 1  ;;  %p498_p12 = pnand %p497_p6, %p852_p11  ;;  %s502_s14 = scalar_lea.vmem %s501_s13, 512 }
  0x40   : > { %p503_p8 = scmp.lt.s32.totalorder %s801_s30, %s501_s13  ;;  %p504_p10 = scmp.lt.s32.totalorder %s502_s14, %s496_s10 }
  0x41   : > { %v704_v20 = vsel %vm153_vm0, %v206_v16, %v208_v14  ;;  %v707_v21 = vsel %vm153_vm0, %v248_v17, %v250_v15  ;;  %v710_v22 = vsel %vm153_vm0, %v205_v18, %v206_v16  ;;  %148 = vrot.lane.b32.xlu1 %v137_v0, %s568_s16  ;;  %v726_v27 = vsel %vm153_vm0, %v247_v19, %v248_v17  ;;  %p499_p13 = pneg %p498_p12 }
  0x42   : > { %146 = vrot.lane.b32.xlu0 %v690_v2, %s568_s16  ;;  %v213_v23 = vmin.f32 %v690_v2, %v704_v20  ;;  %v717_v24 = vmax.f32 %v690_v2, %v704_v20  ;;  %v212_v25 = vmin.f32 %v688_v1, %v710_v22  ;;  %v723_v26 = vmax.f32 %v688_v1, %v710_v22  ;;  %p505_p0 = por %p504_p10, %p503_p8 }
  0x44   : > { %v255_v28 = vmin.f32 %v717_v24, %v707_v21  ;;  %v257_v29 = vmax.f32 %v717_v24, %v707_v21  ;;  %v254_v30 = vmin.f32 %v723_v26, %v726_v27  ;;  %v256_v31 = vmax.f32 %v723_v26, %v726_v27  ;;  %p506_p2 = pnand %p505_p0, %p499_p13 }
  0xab   : > { %v143_v32 = vpop.permute.xlu1 %142  ;;  %v736_v33 = vpop.permute.xlu0 %138 }
  0xac   : > { %v174_v34 = vrot.slane %v143_v32, 1  ;;  %v171_v37 = vrot.slane %v736_v33, 1 }
  0xae   : > { %v181_v39 = vmin.f32 %v143_v32, %v174_v34  ;;  %v184_v58 = vmax.f32 %v143_v32, %v174_v34 }
  0xaf   : > { %v738_v35 = vpop.permute.xlu1 %144 }
  0xb0   : > { %v740_v36 = vpop.permute.xlu0 %140  ;;  %v188_v46 = vrot.slane %v738_v35, 1  ;;  %v222_v49 = vrot.slane %v181_v39, 1  ;;  %v264_v9 = vrot.slane %v184_v58, 1 }
  0xb1   : > { %v172_v38 = vrot.slane %v740_v36, 1 }
  0xb3   : > { %v173_v40 = vsel %vm153_vm0, %v171_v37, %v172_v38  ;;  %v175_v41 = vsel %vm153_vm0, %v172_v38, %v174_v34  ;;  %v149_v44 = vpop.permute.xlu1 %148 }
  0xb4   : > { %v179_v42 = vmin.f32 %v736_v33, %v173_v40  ;;  %v180_v43 = vmin.f32 %v740_v36, %v175_v41  ;;  %v748_v45 = vpop.permute.xlu0 %146  ;;  %v191_v47 = vrot.slane %v149_v44, 1  ;;  %v182_v50 = vmax.f32 %v736_v33, %v173_v40 }
  0xb5   : > { %v189_v48 = vrot.slane %v748_v45, 1  ;;  %v183_v53 = vmax.f32 %v740_v36, %v175_v41 }
  0xb6   : > { %v219_v51 = vrot.slane %v179_v42, 1  ;;  %v220_v52 = vrot.slane %v180_v43, 1  ;;  %v198_v54 = vmin.f32 %v149_v44, %v191_v47  ;;  %v201_v60 = vmax.f32 %v149_v44, %v191_v47 }
  0xb7   : > { %v190_v55 = vsel %vm153_vm0, %v188_v46, %v189_v48  ;;  %v192_v56 = vsel %vm153_vm0, %v189_v48, %v191_v47  ;;  %v261_v0 = vrot.slane %v182_v50, 1  ;;  %v262_v3 = vrot.slane %v183_v53, 1 }
  0xb8   : > { %v221_v57 = vsel %vm153_vm0, %v219_v51, %v220_v52  ;;  %v223_v59 = vsel %vm153_vm0, %v220_v52, %v222_v49  ;;  %v196_v61 = vmin.f32 %v738_v35, %v190_v55  ;;  %v197_v62 = vmin.f32 %v748_v45, %v192_v56 }
  0xb9   : > { %v228_v63 = vmax.f32 %v736_v33, %v221_v57  ;;  %v236_v4 = vrot.slane %v198_v54, 1  ;;  %v229_v5 = vmax.f32 %v740_v36, %v223_v59  ;;  %v199_v6 = vmax.f32 %v738_v35, %v190_v55 }
  0xba   : > { %v200_v7 = vmax.f32 %v748_v45, %v192_v56  ;;  %v233_v8 = vrot.slane %v196_v61, 1  ;;  %v278_v10 = vrot.slane %v201_v60, 1  ;;  %v234_v11 = vrot.slane %v197_v62, 1 }
  0xbb   : > { %v275_v12 = vrot.slane %v199_v6, 1  ;;  %v263_v14 = vsel %vm153_vm0, %v261_v0, %v262_v3  ;;  %v265_v15 = vsel %vm153_vm0, %v262_v3, %v264_v9  ;;  %v226_v46 = vmin.f32 %v736_v33, %v221_v57 }
  0xbc   : > { %v276_v13 = vrot.slane %v200_v7, 1  ;;  %v235_v16 = vsel %vm153_vm0, %v233_v8, %v234_v11  ;;  %v237_v17 = vsel %vm153_vm0, %v234_v11, %v236_v4  ;;  %v268_v18 = vmin.f32 %v228_v63, %v263_v14 }
  0xbd   : > { %v269_v19 = vmin.f32 %v229_v5, %v265_v15  ;;  %v242_v32 = vmax.f32 %v738_v35, %v235_v16  ;;  %v243_v34 = vmax.f32 %v748_v45, %v237_v17  ;;  %v270_v37 = vmax.f32 %v228_v63, %v263_v14 }
  0xbe   : > { %v271_v38 = vmax.f32 %v229_v5, %v265_v15  ;;  %v277_v39 = vsel %vm153_vm0, %v275_v12, %v276_v13  ;;  %v279_v40 = vsel %vm153_vm0, %v276_v13, %v278_v10  ;;  %v227_v47 = vmin.f32 %v740_v36, %v223_v59 }
  0xbf   : > { %v282_v41 = vmin.f32 %v242_v32, %v277_v39  ;;  %v283_v42 = vmin.f32 %v243_v34, %v279_v40  ;;  %v284_v43 = vmax.f32 %v242_v32, %v277_v39  ;;  %v285_v44 = vmax.f32 %v243_v34, %v279_v40 }
  0xc0   : > { %v240_v52 = vmin.f32 %v738_v35, %v235_v16  ;;  %v241_v53 = vmin.f32 %v748_v45, %v237_v17  ;;  %v287_v36 = vmax.f32 %v213_v23, %v227_v47  ;;  %v286_v35 = vmax.f32 %v212_v25, %v226_v46 }
  0xc1   : > { %v288_v48 = vmin.f32 %v270_v37, %v284_v43  ;;  %v289_v49 = vmin.f32 %v271_v38, %v285_v44  ;;  %v290_v50 = vmin.f32 %v268_v18, %v282_v41  ;;  %v291_v51 = vmin.f32 %v269_v19, %v283_v42 }
  0xc2   : > { %v292_v54 = vmax.f32 %v268_v18, %v282_v41  ;;  %v293_v55 = vmax.f32 %v269_v19, %v283_v42  ;;  %v294_v59 = vmax.f32 %v286_v35, %v240_v52 }
  0xc3   : > { %v296_v56 = vmax.f32 %v254_v30, %v290_v50  ;;  %v297_v33 = vmax.f32 %v255_v28, %v291_v51  ;;  %v298_v45 = vmin.f32 %v256_v31, %v288_v48  ;;  %v299_v30 = vmin.f32 %v257_v29, %v289_v49 }
  0xc4   : > { %v295_v28 = vmax.f32 %v287_v36, %v241_v53 }
  0xc5   : > { %v300_v57 = vmin.f32 %v296_v56, %v292_v54  ;;  %v301_v58 = vmin.f32 %v297_v33, %v293_v55 }
  0xc7   : > { %v302_v60 = vmin.f32 %v300_v57, %v298_v45  ;;  %v303_v2 = vmin.f32 %v301_v58, %v299_v30  ;;  %v304_v20 = vmax.f32 %v300_v57, %v298_v45  ;;  %v305_v23 = vmax.f32 %v301_v58, %v299_v30 }
  0xc9   : > { %v306_v1 = vmax.f32 %v294_v59, %v302_v60  ;;  %v307_v22 = vmax.f32 %v295_v28, %v303_v2 }
  0xcb   : > { %v308_v21 = vmin.f32 %v306_v1, %v304_v20  ;;  %v309_v24 = vmin.f32 %v307_v22, %v305_v23 }
  0xcd   : > { %310 = vst [vmem:[%s134_s28] sm:$0xff] %v308_v21  ;;  %311 = vst [vmem:[%s134_s28 + $0x8] sm:$0xff] %v309_v24 }
  0xce   : > { %509 = shalt.err (!%p506_p2)
}
  0xcf   : > { %s510_s19 = scalar_lea.hbm %s799_s4, 256  ;;  %s514_s23 = scalar_lea.hbm %s846_s1, 512 }
  0xd0   : > { %p511_p4 = scmp.ne.s32.totalorder %s799_s4, %s510_s19  ;;  %p515_p9 = scmp.lt.u32.totalorder %s799_s4, %s846_s1 }
  0xd1   : > { %p516_p1 = scmp.lt.u32.totalorder %s514_s23, %s510_s19  ;;  %p518_p6 = scmp.lt.u32.totalorder %s510_s19, %s799_s4 }
  0xd2   : > { %p512_p5 = pnand %p511_p4, %p852_p11 }
  0xd3   : > { %p517_p3 = por %p516_p1, %p515_p9 }
  0xd4   : > { %p513_p7 = pneg %p512_p5 }
  0xd5   : > { %p519_p12 = por %p518_p6, %p517_p3 }
  0xd7   : > { %p520_p13 = pnand %p519_p12, %p513_p7 }
  0xd9   : > { %523 = shalt.err (!%p520_p13)
}
  0xda   : > { %s570_s24 = smov 128   ;;  %s571_s16 = smov 8  }
  0xdb   : > { %416 = dma.vmem_to_hbm [thread:$0]  (%p852_p11), %s801_s30, 256, %s799_s4, %s313_s5, %s570_s24, %s570_s24, %s571_s16  }
  0xdc PF: > { %s341_s25 = sand.u32 1, %s550_s6   ;;  %p853_p8 = scmp.ne.s32.totalorder %s850_s18, 0 }
  0xdd   : > { %p854_p10 = scmp.ge.s32.totalorder %s562_s9, 2  ;;  %s342_s27 = scalar_lea.sflag [#allocation4], %s341_s25 }
  0xdf   : > { %p423_p0 = pnand %p854_p10, %p853_p8 }
  0xe1   : > { %545 = dma.done.wait (!%p423_p0), %s342_s27, 256  }
  0xe2   : > { %547 = vsyncadd (!%p423_p0), %s342_s27, 4294967040  ;;  %p14_p2 = scmp.ge.s32.totalorder %s607_s12, 4   ;;  %s855_s6 = smov %s554_s7 }
  0xe3   : > { %s856_s7 = smov %s558_s8  ;;  %s857_s8 = smov %s619_s15 }
  0xe4   : > { %s858_s9 = smov %s607_s12  ;;  %16 = sbr.rel (!%p14_p2) target bundleno = 5 (0x5), region = 69 }
  0xeb   :  { %347 = vsyncpa [#allocation3], 1 }
  0xec   :  { %349 = vsyncpa [#allocation3 + $0x1], 1 }
  0xed   :  { %350 = vsyncpa [#allocation4], 1 }
  0xee   :  { %352 = vsyncpa [#allocation4 + $0x1], 1 }

</bundles_post_ra>
